<compile_context>
chip_gen: v7x
topology: tpu7x:2x2x1
jax: 0.10.0
libtpu: 0.0.40
codegen_flags: <defaults>
</compile_context>

<pallas_src>
import functools

import numpy as np
import jax
import jax.numpy as jnp
from jax import lax
from jax.experimental import pallas as pl
from jax.experimental.pallas import tpu as pltpu


def _compute_dtype(dtype):
    """Pick a compare-network dtype that is safe on v5e/v6e/v7x."""
    if jnp.issubdtype(dtype, jnp.floating) and dtype.itemsize <= 4:
        # f32 compare network is safe on every generation (v5e has no bf16 VALU);
        # bf16/f16 values round-trip exactly through f32.
        return jnp.float32, np.float32(-np.inf)
    if jnp.issubdtype(dtype, jnp.signedinteger) and dtype.itemsize <= 4:
        return jnp.int32, np.int32(np.iinfo(np.int32).min)
    if jnp.issubdtype(dtype, jnp.unsignedinteger) and dtype.itemsize <= 2:
        return jnp.int32, np.int32(np.iinfo(np.int32).min)
    # TODO(synk): uint32 / int64 / float64 need an order-preserving remap (or a wider
    # compare network) -- not implemented here.
    raise NotImplementedError("k_max_pooling: unsupported dtype %s" % dtype)


def _kmax_kernel(x_ref, o_ref, *, k, rt_sub, seq_unroll):
    """x_ref: (S, RT_BLOCK) tile (top-k axis on sublanes). o_ref: (k, RT_BLOCK)."""
    S, rt_block = x_ref.shape
    n_sub = rt_block // rt_sub            # wrapper guarantees exact division
    cdt, neg = _compute_dtype(x_ref.dtype)

    nfull = S // 8                        # full (8, rt_sub) sequence chunks
    rem = S - nfull * 8                   # leftover sequence rows (< 8)

    def merge_two(A, B):
        # A, B: k sorted-descending lists (elementwise per sublane/lane) from disjoint
        # streams.  Sorted top-k of the union:
        #   M[i] = max(A[i], B[i], max_{0<=p<i} min(A[p], B[i-1-p]))
        M = []
        for i in range(k):
            cand = jnp.maximum(A[i], B[i])
            for p in range(i):
                cand = jnp.maximum(cand, jnp.minimum(A[p], B[i - 1 - p]))
            M.append(cand)
        return M

    def process_cols(col):
        lanes = pl.ds(col, rt_sub)

        if nfull > 0:
            def seq_body(i, regs):
                s0 = pl.multiple_of(i * 8, 8)
                v = x_ref[pl.ds(s0, 8), lanes].astype(cdt)     # one vreg-dense chunk
                regs = list(regs)
                for j in range(k):                             # sorted-insertion bubble
                    hi = jnp.maximum(regs[j], v)
                    v = jnp.minimum(regs[j], v)
                    regs[j] = hi
                return tuple(regs)

            init = tuple(jnp.full((8, rt_sub), neg, dtype=cdt) for _ in range(k))
            regs = list(lax.fori_loop(0, nfull, seq_body, init, unroll=seq_unroll))

            # Tree-merge the 8 per-sublane streams: 8 -> 4 -> 2 -> 1 sublanes
            # (3 rounds of sublane slices + the k^2 compare network above).
            h = 8
            while h > 1:
                half = h // 2
                regs = merge_two([r[:half, :] for r in regs],
                                 [r[half:h, :] for r in regs])
                h = half
            topk = regs                                        # k arrays of (1, rt_sub)
        else:
            topk = [jnp.full((1, rt_sub), neg, dtype=cdt) for _ in range(k)]

        # Remainder rows (S % 8): plain (1, rt_sub) sorted insertions (epilogue only).
        for t in range(rem):
            v = x_ref[pl.ds(nfull * 8 + t, 1), lanes].astype(cdt)
            for j in range(k):
                hi = jnp.maximum(topk[j], v)
                v = jnp.minimum(topk[j], v)
                topk[j] = hi

        # Single lane-dense (k, rt_sub) store.
        tile = topk[0] if k == 1 else jnp.concatenate(topk, axis=0)
        o_ref[:, lanes] = tile.astype(o_ref.dtype)

    if n_sub == 1:
        process_cols(0)
    else:
        def lane_body(c, carry):
            process_cols(pl.multiple_of(c * rt_sub, rt_sub))
            return carry
        lax.fori_loop(0, n_sub, lane_body, 0)


def k_max_pooling(x, k, axis):
    """Equivalent of KMaxPooling(k, axis).forward(x): top-k values, sorted, along axis."""
    shape = x.shape
    ndim = x.ndim
    if axis < 0 or axis >= ndim:
        raise ValueError("axis must be 0~%d, now is %d" % (ndim - 1, axis))
    if k < 1 or k > shape[axis]:
        raise ValueError("k must be in 1 ~ %d, now k is %d" % (shape[axis], k))
    _compute_dtype(x.dtype)  # validate dtype early (clear error outside tracing)

    out_shape = shape[:axis] + (k,) + shape[axis + 1:]
    S = shape[axis]
    lead = int(np.prod(shape[:axis]))
    tail = int(np.prod(shape[axis + 1:]))

    transposed = False
    if tail == 1 and lead > 1:
        # Top-k axis is the minor (lane) axis: one transpose pass puts it on sublanes.
        # TODO(synk): a lane-axis top-k variant would avoid this extra HBM pass.
        x3 = jnp.transpose(x.reshape(lead, S)).reshape(1, S, lead)
        lead_, tail_ = 1, lead
        transposed = True
    else:
        x3 = x.reshape(lead, S, tail)   # free reshape, no HBM transpose / pad passes
        lead_, tail_ = lead, tail

    # ---- lane tiling: DMA block (rt_block) decoupled from compute sub-chunk (rt_sub) --
    elt = x3.dtype.itemsize
    if tail_ <= 128:
        rt_block = tail_                 # block minor dim == full array dim (allowed)
        rt_sub = tail_
    else:
        groups_total = -(-tail_ // 128)                       # tail in 128-lane groups
        # ~4 MiB input block => <= 8 MiB double-buffered, fits every generation's VMEM.
        budget_groups = max(1, (4 * 1024 * 1024) // (S * elt) // 128)
        groups = min(groups_total, budget_groups)
        if lead_ == 1 and groups_total >= 2:
            # ensure >= 2 tail blocks so the parallel grid spans both v7x TensorCores
            groups = min(groups, -(-groups_total // 2))
        # Per-sub-chunk register budget: (k regs + in-flight chunk) * rt_sub/128 vregs.
        cap_groups = 4 if (k + 2) * 4 <= 48 else (2 if (k + 2) * 2 <= 48 else 1)
        sub_groups = min(cap_groups, groups)
        groups = max(sub_groups, (groups // sub_groups) * sub_groups)
        rt_sub = 128 * sub_groups
        rt_block = 128 * groups
    grid_t = -(-tail_ // rt_block)
    grid = (lead_, grid_t)

    seq_unroll = max(1, min(4 if k <= 4 else 2, S // 8))

    out3 = pl.pallas_call(
        functools.partial(_kmax_kernel, k=k, rt_sub=rt_sub, seq_unroll=seq_unroll),
        out_shape=jax.ShapeDtypeStruct((lead_, k, tail_), x.dtype),
        grid=grid,
        in_specs=[pl.BlockSpec((None, S, rt_block), lambda l, t: (l, 0, t))],
        out_specs=pl.BlockSpec((None, k, rt_block), lambda l, t: (l, 0, t)),
        compiler_params=pltpu.CompilerParams(
            dimension_semantics=("parallel", "parallel"),
            vmem_limit_bytes=32 * 1024 * 1024),
    )(x3)

    if transposed:
        out = jnp.transpose(out3.reshape(k, lead)).reshape(out_shape)
    else:
        out = out3.reshape(out_shape)
    return out


if __name__ == "__main__":
    # KMaxPooling has no learnable parameters; nothing to initialize.
    key = jax.random.PRNGKey(0)

    tests = [
        ((2, 8, 32), 3, 1),      # primary: (batch, seq, hidden), top-k over seq
        ((3, 13, 160), 2, 1),    # S % 8 != 0 + partial (OOB) lane block
        ((2, 16, 1024), 3, 1),   # in-kernel lane sub-chunk loop (rt_block > rt_sub)
        ((2, 6, 16), 2, 2),      # top-k along the minor axis (transpose fallback)
    ]
    for i, (shape, kk, ax) in enumerate(tests):
        x = jax.random.normal(jax.random.fold_in(key, i), shape, dtype=jnp.float32)
        out = jax.block_until_ready(k_max_pooling(x, k=kk, axis=ax))

        # Reference: top-k values along the same axis, sorted descending.
        ref = jnp.moveaxis(jax.lax.top_k(jnp.moveaxis(x, ax, -1), kk)[0], -1, ax)
        expected_shape = shape[:ax] + (kk,) + shape[ax + 1:]

        assert out.shape == expected_shape, (out.shape, expected_shape)
        assert out.dtype == x.dtype
        np.testing.assert_allclose(np.asarray(out), np.asarray(ref),
                                   rtol=1e-6, atol=1e-6)

    print("KERNEL_OK")
</pallas_src>

<mosaic_0001>
module attributes {stable_mosaic.version = 11 : i64} {
  func.func @_kmax_kernel(%arg0: i32, %arg1: i32, %arg2: memref<1x8x32xf32, #tpu.memory_space<vmem>>, %arg3: memref<1x3x32xf32, #tpu.memory_space<vmem>>) attributes {dimension_semantics = [#tpu.dimension_semantics<parallel>, #tpu.dimension_semantics<parallel>], iteration_bounds = array<i64: 2, 1>, scalar_prefetch = 0 : i64, scratch_operands = 0 : i64, tpu.core_type = #tpu.core_type<tc>, window_params = [{transform_indices = @transform_0, window_bounds = array<i64: 1, 8, 32>}, {transform_indices = @transform_1, window_bounds = array<i64: 1, 3, 32>}]} {
    %cst = arith.constant 0xFF800000 : f32
    %0 = vector.broadcast %cst : f32 to vector<8x32xf32>
    %cst_0 = arith.constant 0xFF800000 : f32
    %1 = vector.broadcast %cst_0 : f32 to vector<8x32xf32>
    %cst_1 = arith.constant 0xFF800000 : f32
    %2 = vector.broadcast %cst_1 : f32 to vector<8x32xf32>
    %c0_i32 = arith.constant 0 : i32
    %c8_i32 = arith.constant 8 : i32
    %3 = arith.muli %c0_i32, %c8_i32 : i32
    %4 = tpu.assume_multiple %3, 8 : i32
    %c0 = arith.constant 0 : index
    %5 = arith.index_cast %4 : i32 to index
    %c0_2 = arith.constant 0 : index
    %6 = vector.load %arg2[%c0, %5, %c0_2] : memref<1x8x32xf32, #tpu.memory_space<vmem>>, vector<1x8x32xf32>
    %7 = vector.shape_cast %6 : vector<1x8x32xf32> to vector<8x32xf32>
    %8 = arith.maximumf %0, %7 : vector<8x32xf32>
    %9 = arith.minimumf %0, %7 : vector<8x32xf32>
    %10 = arith.maximumf %1, %9 : vector<8x32xf32>
    %11 = arith.minimumf %1, %9 : vector<8x32xf32>
    %12 = arith.maximumf %2, %11 : vector<8x32xf32>
    %c1_i32 = arith.constant 1 : i32
    %13 = vector.extract_strided_slice %8 {offsets = [0, 0], sizes = [4, 32], strides = [1, 1]} : vector<8x32xf32> to vector<4x32xf32>
    %14 = vector.extract_strided_slice %10 {offsets = [0, 0], sizes = [4, 32], strides = [1, 1]} : vector<8x32xf32> to vector<4x32xf32>
    %15 = vector.extract_strided_slice %12 {offsets = [0, 0], sizes = [4, 32], strides = [1, 1]} : vector<8x32xf32> to vector<4x32xf32>
    %16 = vector.extract_strided_slice %8 {offsets = [4, 0], sizes = [4, 32], strides = [1, 1]} : vector<8x32xf32> to vector<4x32xf32>
    %17 = vector.extract_strided_slice %10 {offsets = [4, 0], sizes = [4, 32], strides = [1, 1]} : vector<8x32xf32> to vector<4x32xf32>
    %18 = vector.extract_strided_slice %12 {offsets = [4, 0], sizes = [4, 32], strides = [1, 1]} : vector<8x32xf32> to vector<4x32xf32>
    %19 = arith.maximumf %13, %16 : vector<4x32xf32>
    %20 = arith.maximumf %14, %17 : vector<4x32xf32>
    %21 = arith.minimumf %13, %16 : vector<4x32xf32>
    %22 = arith.maximumf %20, %21 : vector<4x32xf32>
    %23 = arith.maximumf %15, %18 : vector<4x32xf32>
    %24 = arith.minimumf %13, %17 : vector<4x32xf32>
    %25 = arith.maximumf %23, %24 : vector<4x32xf32>
    %26 = arith.minimumf %14, %16 : vector<4x32xf32>
    %27 = arith.maximumf %25, %26 : vector<4x32xf32>
    %28 = vector.extract_strided_slice %19 {offsets = [0, 0], sizes = [2, 32], strides = [1, 1]} : vector<4x32xf32> to vector<2x32xf32>
    %29 = vector.extract_strided_slice %22 {offsets = [0, 0], sizes = [2, 32], strides = [1, 1]} : vector<4x32xf32> to vector<2x32xf32>
    %30 = vector.extract_strided_slice %27 {offsets = [0, 0], sizes = [2, 32], strides = [1, 1]} : vector<4x32xf32> to vector<2x32xf32>
    %31 = vector.extract_strided_slice %19 {offsets = [2, 0], sizes = [2, 32], strides = [1, 1]} : vector<4x32xf32> to vector<2x32xf32>
    %32 = vector.extract_strided_slice %22 {offsets = [2, 0], sizes = [2, 32], strides = [1, 1]} : vector<4x32xf32> to vector<2x32xf32>
    %33 = vector.extract_strided_slice %27 {offsets = [2, 0], sizes = [2, 32], strides = [1, 1]} : vector<4x32xf32> to vector<2x32xf32>
    %34 = arith.maximumf %28, %31 : vector<2x32xf32>
    %35 = arith.maximumf %29, %32 : vector<2x32xf32>
    %36 = arith.minimumf %28, %31 : vector<2x32xf32>
    %37 = arith.maximumf %35, %36 : vector<2x32xf32>
    %38 = arith.maximumf %30, %33 : vector<2x32xf32>
    %39 = arith.minimumf %28, %32 : vector<2x32xf32>
    %40 = arith.maximumf %38, %39 : vector<2x32xf32>
    %41 = arith.minimumf %29, %31 : vector<2x32xf32>
    %42 = arith.maximumf %40, %41 : vector<2x32xf32>
    %43 = vector.extract_strided_slice %34 {offsets = [0, 0], sizes = [1, 32], strides = [1, 1]} : vector<2x32xf32> to vector<1x32xf32>
    %44 = vector.extract_strided_slice %37 {offsets = [0, 0], sizes = [1, 32], strides = [1, 1]} : vector<2x32xf32> to vector<1x32xf32>
    %45 = vector.extract_strided_slice %42 {offsets = [0, 0], sizes = [1, 32], strides = [1, 1]} : vector<2x32xf32> to vector<1x32xf32>
    %46 = vector.extract_strided_slice %34 {offsets = [1, 0], sizes = [1, 32], strides = [1, 1]} : vector<2x32xf32> to vector<1x32xf32>
    %47 = vector.extract_strided_slice %37 {offsets = [1, 0], sizes = [1, 32], strides = [1, 1]} : vector<2x32xf32> to vector<1x32xf32>
    %48 = vector.extract_strided_slice %42 {offsets = [1, 0], sizes = [1, 32], strides = [1, 1]} : vector<2x32xf32> to vector<1x32xf32>
    %49 = arith.maximumf %43, %46 : vector<1x32xf32>
    %50 = arith.maximumf %44, %47 : vector<1x32xf32>
    %51 = arith.minimumf %43, %46 : vector<1x32xf32>
    %52 = arith.maximumf %50, %51 : vector<1x32xf32>
    %53 = arith.maximumf %45, %48 : vector<1x32xf32>
    %54 = arith.minimumf %43, %47 : vector<1x32xf32>
    %55 = arith.maximumf %53, %54 : vector<1x32xf32>
    %56 = arith.minimumf %44, %46 : vector<1x32xf32>
    %57 = arith.maximumf %55, %56 : vector<1x32xf32>
    %58 = tpu.concatenate %49, %52, %57 in 0 : vector<1x32xf32>, vector<1x32xf32>, vector<1x32xf32> -> vector<3x32xf32>
    %c0_3 = arith.constant 0 : index
    %c0_4 = arith.constant 0 : index
    %c0_5 = arith.constant 0 : index
    %59 = vector.load %arg3[%c0_3, %c0_4, %c0_5] : memref<1x3x32xf32, #tpu.memory_space<vmem>>, vector<1x3x32xf32>
    %60 = vector.shape_cast %59 : vector<1x3x32xf32> to vector<3x32xf32>
    %61 = vector.shape_cast %58 : vector<3x32xf32> to vector<1x3x32xf32>
    tpu.vector_store %arg3[%c0_3, %c0_4, %c0_5], %61 {strides = array<i32>} : memref<1x3x32xf32, #tpu.memory_space<vmem>>, vector<1x3x32xf32>,
    return
  }
  func.func @transform_0(%arg0: i32, %arg1: i32) -> (i32, i32, i32) {
    %c0_i32 = arith.constant 0 : i32
    %c0_i32_0 = arith.constant 0 : i32
    return %arg0, %c0_i32, %arg1 : i32, i32, i32
  }
  func.func @transform_1(%arg0: i32, %arg1: i32) -> (i32, i32, i32) {
    %c0_i32 = arith.constant 0 : i32
    %c0_i32_0 = arith.constant 0 : i32
    return %arg0, %c0_i32, %arg1 : i32, i32, i32
  }
}

</mosaic_0001>

<bundles_post_ra>
// kernel: tpu_custom_call.1
= control target key start
LH: loop header
LB: loop body
LE: loop exit
PB: predicated region body
PF: predicated region fallthrough
CT: control target
= control target key end

     0   :  { %6 = vsyncpa [#allocation3], 0  ;;  %s592_s0 = inlined_call_operand.hbm [shape: f32[2,8,32], index: 0, kind: input, shape index: {}]   ;;  %s593_s1 = inlined_call_operand.vmem [shape: f32[2,3,32], index: 1, kind: output, shape index: {}]  }
   0x1   :  { %8 = vsyncpa [#allocation3 + $0x1], 0  ;;  %s467_s6 = smov 0   ;;  %s469_s7 = smov 0  }
   0x2   :  { %s471_s8 = smov 0   ;;  %s473_s9 = smov 0  }
   0x3   :  { %s475_s10 = smov 0   ;;  %s477_s11 = smov 0  }
   0x4 LB: > { %s308_s12 = sadd.s32 4294967295, %s454_s11   ;;  %s26_s13 = sadd.s32 1, %s450_s10  ;;  %s454_s11 = sphi %s477_s11, %s14_s11   ;;  %s450_s10 = sphi %s475_s10, %s603_s10   ;;  %s446_s9 = sphi %s473_s9, %s602_s9   ;;  %s442_s8 = sphi %s471_s8, %s601_s8   ;;  %s438_s7 = sphi %s469_s7, %s600_s7   ;;  %s434_s6 = sphi %s467_s6, %s599_s6  }
   0x5   : > { %p28_p0 = scmp.ge.s32.totalorder %s26_s13, 2  ;;  %s35_s14 = sadd.s32 1, %s442_s8 }
   0x6   : > { %p42_p1 = scmp.ne.s32.totalorder %s442_s8, %s438_s7  ;;  %p43_p2 = scmp.eq.s32.totalorder %s454_s11, 0 }
   0x7   : > { %s605_s13 = smov (%p28_p0, %s26_s13), 0  ;;  %p48_p4 = scmp.ne.s32.totalorder %s438_s7, %s434_s6 }
   0x8   : > { %p503_p3 = por %p43_p2, %p42_p1  ;;  %s30_s16 = ssub.s32 %s450_s10, %s605_s13 }
   0x9   : > { %p49_p5 = scmp.eq.s32.totalorder %s308_s12, 0  ;;  %p33_p6 = scmp.eq.s32.totalorder %s30_s16, 0 }
   0xa   : > { %p325_p8 = scmp.lt.s32.totalorder %s454_s11, 2  ;;  %s100_s19 = sand.u32 1, %s442_s8  }
   0xb   : > { %p510_p7 = por %p49_p5, %p48_p4  ;;  %s313_s20 = sshll.u32 %s450_s10, 7 }
   0xc   : > { %s516_s18 = scalar_select %p33_p6, %s442_s8, %s35_s14  }
   0xd   : > { %s312_s21 = sshll.u32 %s100_s19, 3  ;;  %s523_s24 = scalar_lea.hbm %s592_s0, %s313_s20 }
   0xe   : > { %s104_s25 = scalar_lea.vmem [#allocation2], %s312_s21  ;;  %p527_p9 = pnand %p325_p8, %p503_p3 }
   0xf   : > { %s112_s26 = sshll.u32 %s104_s25, 4  ;;  %s101_s28 = scalar_lea.sflag [#allocation3], %s100_s19  ;;  %s531_s26 = int_to_ptr.vmem [resolvable:$true] %s112_s26 }
  0x10   : > { %s374_s29 = scalar_lea.hbm %s523_s24, 128  ;;  %p376_p13 = pneg %p527_p9 }
  0x11   : > { %p375_p12 = scmp.ne.s32.totalorder %s523_s24, %s374_s29  ;;  %s379_s3 = scalar_lea.hbm %s592_s0, 256 }
  0x12   : > { %p380_p2 = scmp.lt.u32.totalorder %s523_s24, %s592_s0  ;;  %p381_p3 = scmp.lt.u32.totalorder %s379_s3, %s374_s29 }
  0x13   : > { %p377_p0 = pnand %p376_p13, %p375_p12  ;;  %p383_p5 = scmp.lt.u32.totalorder %s374_s29, %s523_s24 }
  0x14   : > { %p382_p4 = por %p381_p3, %p380_p2 }
  0x15   : > { %p378_p1 = pneg %p377_p0 }
  0x16   : > { %p384_p6 = por %p383_p5, %p382_p4 }
  0x18   : > { %p385_p8 = pnand %p384_p6, %p378_p1 }
  0x1a   : > { %388 = shalt.err (!%p385_p8)
}
  0x1b   : > { %s389_s6 = scalar_lea.vmem %s531_s26, 128  ;;  %s456_s12 = smov [#allocation2]  }
  0x1c   : > { %p390_p12 = scmp.ne.s32.totalorder %s531_s26, %s389_s6  ;;  %s394_s14 = sshll.u32 %s456_s12, 4  ;;  %s395_s14 = int_to_ptr.vmem [resolvable:$false] %s394_s14 }
  0x1d   : > { %s396_s15 = scalar_lea.vmem %s395_s14, 256  ;;  %p397_p11 = scmp.lt.s32.totalorder %s531_s26, %s395_s14 }
  0x1e   : > { %p392_p0 = pnand %p390_p12, %p376_p13  ;;  %p398_p2 = scmp.lt.s32.totalorder %s396_s15, %s389_s6 }
  0x20   : > { %p393_p10 = pneg %p392_p0  ;;  %p399_p3 = por %p398_p2, %p397_p11 }
  0x22   : > { %p400_p4 = pnand %p399_p3, %p393_p10 }
  0x24   : > { %403 = shalt.err (!%p400_p4)
}
  0x25   : > { %324 = dma.hbm_to_vmem [thread:$0]  (!%p527_p9), %s523_s24, 128, %s531_s26, %s101_s28  }
  0x26   : > { %p597_p1 = scmp.lt.s32.totalorder %s454_s11, 3  ;;  %p598_p5 = scmp.ge.s32.totalorder %s454_s11, 1 }
  0x28   : > { %p118_p13 = pnand %p598_p5, %p597_p1 }
  0x29   : > { %s123_s16 = sand.u32 (!%p118_p13), 1, %s438_s7  }
  0x2a   : > { %121 = sbr.rel (%p118_p13) target bundleno = 83 (0x53), region = 24  ;;  %s315_s19 = sshll.u32 (!%p118_p13), %s123_s16, 3 }
  0x2b   : > { %s124_s20 = scalar_lea.sflag (!%p118_p13), [#allocation3], %s123_s16  ;;  %s127_s21 = scalar_lea.vmem (!%p118_p13), [#allocation2], %s315_s19 }
  0x31   : > { %429 = dma.done.wait (%p510_p7), %s124_s20, 128  }
  0x32   : > { %431 = vsyncadd (%p510_p7), %s124_s20, 4294967168  ;;  %v155_v0 = vld [vmem:[%s127_s21] sm:$0xff]  ;;  %p148_p7 = scmp.lt.s32.totalorder %s446_s9, 1  ;;  %vm218_vm0 = vcmask 1040384   ;;  %vm220_vm1 = vcmask 1041408   ;;  %vm222_vm2 = vcmask 256000  }
  0x33   : > { %v156_v1 = vmin.f32 %v155_v0, -inf  ;;  %v159_v2 = vrot.slane %v155_v0, 4 }
  0x34   : > { %s607_s9 = smov (!%p148_p7, %s446_s9), 1 }
  0x35   : > { %v157_v3 = vmin.f32 %v156_v1, -inf  ;;  %v161_v4 = vmax.f32 %v155_v0, %v159_v2  ;;  %v163_v5 = vrot.slane %v156_v1, 4  ;;  %v166_v6 = vmin.f32 %v155_v0, %v159_v2  ;;  %s316_s17 = sshll.u32 %s607_s9, 2 }
  0x36   : > { %v174_v13 = vmin.f32 %v156_v1, %v159_v2  ;;  %s154_s24 = scalar_lea.vmem %s593_s1, %s316_s17 }
  0x37   : > { %v165_v7 = vmax.f32 %v156_v1, %v163_v5  ;;  %v169_v8 = vrot.slane %v157_v3, 4  ;;  %v172_v9 = vmin.f32 %v155_v0, %v163_v5  ;;  %v177_v10 = vrot.slane %v161_v4, 2 }
  0x39   : > { %v167_v11 = vmax.f32 %v165_v7, %v166_v6  ;;  %v171_v12 = vmax.f32 %v157_v3, %v169_v8  ;;  %v179_v14 = vmax.f32 %v161_v4, %v177_v10  ;;  %v184_v17 = vmin.f32 %v161_v4, %v177_v10 }
  0x3b   : > { %v173_v15 = vmax.f32 %v171_v12, %v172_v9  ;;  %v181_v16 = vrot.slane %v167_v11, 2  ;;  %v195_v20 = vrot.slane %v179_v14, 1  ;;  %v192_v25 = vmin.f32 %v167_v11, %v177_v10 }
  0x3d   : > { %v175_v18 = vmax.f32 %v173_v15, %v174_v13  ;;  %v183_v19 = vmax.f32 %v167_v11, %v181_v16  ;;  %v190_v23 = vmin.f32 %v161_v4, %v181_v16  ;;  %v202_v27 = vmin.f32 %v179_v14, %v195_v20 }
  0x3e   : > { %v197_v36 = vmax.f32 %v179_v14, %v195_v20 }
  0x3f   : > { %v187_v21 = vrot.slane %v175_v18, 2  ;;  %v185_v22 = vmax.f32 %v183_v19, %v184_v17 }
  0x41   : > { %v189_v24 = vmax.f32 %v175_v18, %v187_v21  ;;  %v199_v26 = vrot.slane %v185_v22, 1  ;;  %v210_v35 = vmin.f32 %v185_v22, %v195_v20 }
  0x43   : > { %v191_v28 = vmax.f32 %v189_v24, %v190_v23  ;;  %v201_v29 = vmax.f32 %v185_v22, %v199_v26  ;;  %v208_v33 = vmin.f32 %v179_v14, %v199_v26 }
  0x45   : > { %v193_v30 = vmax.f32 %v191_v28, %v192_v25  ;;  %v203_v31 = vmax.f32 %v201_v29, %v202_v27 }
  0x47   : > { %v205_v32 = vrot.slane %v193_v30, 1  ;;  %v213_v37 = vrot.slane %v203_v31, 7 }
  0x49   : > { %v207_v34 = vmax.f32 %v193_v30, %v205_v32  ;;  %v219_v40 = vsel %vm218_vm0, %v197_v36, %v213_v37 }
  0x4b   : > { %v209_v38 = vmax.f32 %v207_v34, %v208_v33 }
  0x4d   : > { %v211_v39 = vmax.f32 %v209_v38, %v210_v35 }
  0x4f   : > { %v216_v41 = vrot.slane %v211_v39, 6 }
  0x51   : > { %v221_v42 = vsel %vm220_vm1, %v219_v40, %v216_v41 }
  0x52   : > { %223 = vst.msk [vmem:[%s154_s24] sm:$0x7] %vm222_vm2, %v221_v42 }
  0x53 PF: > { %s14_s11 = sadd.s32 1, %s454_s11   ;;  %s599_s6 = smov %s438_s7 }
  0x54   : > { %p11_p9 = scmp.ge.s32.totalorder %s14_s11, 4   ;;  %s600_s7 = smov %s442_s8 }
  0x55   : > { %s601_s8 = smov %s516_s18  ;;  %s602_s9 = smov %s450_s10 }
  0x56   : > { %s603_s10 = smov %s605_s13  ;;  %13 = sbr.rel (!%p11_p9) target bundleno = 4 (0x4), region = 64 }
  0x5d   :  { %249 = vsyncpa [#allocation3], 1 }
  0x5e   :  { %251 = vsyncpa [#allocation3 + $0x1], 1 }

</bundles_post_ra>
